<compile_context>
chip_gen: v7x
topology: tpu7x:2x2x1
jax: 0.10.0
libtpu: 0.0.40
codegen_flags: <defaults>
</compile_context>

<pallas_src>
import functools
import math

import jax
import jax.numpy as jnp
from jax.experimental import pallas as pl
from jax.experimental.pallas import tpu as pltpu


# ----------------------------------------------------------------------------
# Pallas kernel: grouped temporal convolution with fused 'same' zero padding
# ----------------------------------------------------------------------------
def _wavelet_conv_kernel(filt_ref, x_ref, o_ref, xpad_ref, *, ksize, pad_l, opg):
    # filt_ref : SMEM (C_out * K,)     flattened wavelet filter bank
    # x_ref    : VMEM (H, W)           one input channel of one batch item
    # o_ref    : VMEM (opg, H, W)      the opg output channels of this group
    # xpad_ref : VMEM (H, W + K - 1)   f32 scratch: zero-padded input tile
    g = pl.program_id(1)                     # group index == input channel index
    h, w = x_ref.shape
    pad_r = ksize - 1 - pad_l

    # Fused 'same' zero padding: build the padded tile in VMEM once per input
    # tile (no host-side jnp.pad HBM round trip). Cast to f32 exactly once.
    x_f32 = x_ref[...].astype(jnp.float32)
    if pad_l:
        xpad_ref[:, :pad_l] = jnp.zeros((h, pad_l), jnp.float32)
    if pad_r:
        xpad_ref[:, pad_l + w:] = jnp.zeros((h, pad_r), jnp.float32)
    xpad_ref[:, pad_l:pad_l + w] = x_f32

    base = g * (opg * ksize)
    accs = [jnp.zeros((h, w), jnp.float32) for _ in range(opg)]
    for k in range(ksize):                   # static & small -> unrolled
        # One (possibly lane-shifted) window per tap, shared by all opg outputs.
        window = x_f32 if k == pad_l else xpad_ref[:, k:k + w]
        for o in range(opg):                 # static & small -> unrolled
            coeff = filt_ref[base + o * ksize + k]   # scalar read from SMEM
            accs[o] = accs[o] + coeff * window       # VPU mul+add per tap
    for o in range(opg):
        o_ref[o] = accs[o].astype(o_ref.dtype)


def wavelet_conv(x, filt, *, out_channels):
    """Grouped temporal conv: x (N, C_in, H, W), filt (C_out, K) -> (N, C_out, H, W)."""
    n, c_in, h, w = x.shape
    c_out, k = filt.shape
    assert c_out == out_channels and c_out % c_in == 0
    opg = c_out // c_in
    # TODO(synk): TemporalPad source not provided; assuming symmetric zero
    # 'same' padding along the last axis (exact for odd kernel_size).
    pad_l = (k - 1) // 2

    kernel = functools.partial(_wavelet_conv_kernel, ksize=k, pad_l=pad_l, opg=opg)
    flops = 2 * k * n * c_out * h * w
    bytes_accessed = (x.size + n * c_out * h * w) * x.dtype.itemsize + filt.size * 4

    return pl.pallas_call(
        kernel,
        out_shape=jax.ShapeDtypeStruct((n, c_out, h, w), x.dtype),
        grid=(n, c_in),
        in_specs=[
            pl.BlockSpec(memory_space=pltpu.MemorySpace.SMEM),            # filter bank
            pl.BlockSpec((None, None, h, w), lambda i, g: (i, g, 0, 0)),  # input tile
        ],
        # Output block covers the whole group's opg channels for this (n, c_in).
        out_specs=pl.BlockSpec((None, opg, h, w), lambda i, g: (i, g, 0, 0)),
        scratch_shapes=[pltpu.VMEM((h, w + k - 1), jnp.float32)],
        compiler_params=pltpu.CompilerParams(
            dimension_semantics=("parallel", "parallel")),
        cost_estimate=pl.CostEstimate(
            flops=flops, transcendentals=0, bytes_accessed=bytes_accessed),
    )(filt.reshape(-1), x)


# ----------------------------------------------------------------------------
# Parameter / filter construction (glue, mirrors TemporalFilter semantics)
# ----------------------------------------------------------------------------
def make_wavelet_params(key, out_channels, fmin_init, fmax_init):
    k1, k2 = jax.random.split(key)
    coef_freq = fmin_init + jax.random.uniform(k1, (out_channels,)) * (fmax_init - fmin_init)
    u = jax.random.uniform(k2, (out_channels,)) * 0.95 + 0.025
    coef_bandwidth = jnp.log(u / (1.0 - u))
    return coef_freq.astype(jnp.float32), coef_bandwidth.astype(jnp.float32)


def create_frequencies(coef_freq, coef_bandwidth,
                       margin_frequency=0.3, margin_bandwidth=0.05):
    freq = margin_frequency + jax.nn.softplus(coef_freq)
    bandwidth = jax.nn.sigmoid(coef_bandwidth) * (1 - 2 * margin_bandwidth) + margin_bandwidth
    bandwidth = bandwidth * freq
    return freq, bandwidth


def create_filters(freq, bandwidth, kernel_size, srate):
    # _scale = arange(-K//2 + 1, K//2 + 1) / srate   (torch floor-div semantics)
    lo = -kernel_size // 2 + 1
    hi = kernel_size // 2 + 1
    scale = jnp.arange(lo, hi, dtype=jnp.float32) / srate           # (K,)
    freq = freq.reshape(-1, 1)                                      # (C_out, 1)
    bandwidth = bandwidth.reshape(-1, 1)
    sigma2 = 2 * math.log(2) / (bandwidth * math.pi) ** 2
    filt = (2 * math.pi * sigma2) ** (-0.5) / (srate / 2)
    filt = filt * jnp.cos(2 * math.pi * freq * scale[None, :])
    filt = filt * jnp.exp(-scale[None, :] ** 2 / (2 * sigma2))
    return filt.astype(jnp.float32)                                 # (C_out, K)


def wavelet_layer2d_forward(x, coef_freq, coef_bandwidth, *,
                            kernel_size, srate, out_channels):
    n, c_in, h, w = x.shape
    assert out_channels % c_in == 0
    freq, bandwidth = create_frequencies(coef_freq, coef_bandwidth)
    filt = create_filters(freq, bandwidth, kernel_size, srate)      # (C_out, K)
    out = wavelet_conv(x, filt, out_channels=out_channels)
    return out, filt


# ----------------------------------------------------------------------------
if __name__ == "__main__":
    # Small, deterministic demo shapes. width is a multiple of 128 so output
    # stores are lane-dense (unmasked vst).
    batch, in_channels, out_channels = 2, 4, 8
    height, width = 8, 128
    kernel_size, srate = 7, 100
    fmin_init, fmax_init = 1.0, 40.0

    key = jax.random.PRNGKey(0)
    kx, kp = jax.random.split(key)
    x = jax.random.normal(kx, (batch, in_channels, height, width), dtype=jnp.float32)
    coef_freq, coef_bandwidth = make_wavelet_params(kp, out_channels, fmin_init, fmax_init)

    out, filt = wavelet_layer2d_forward(
        x, coef_freq, coef_bandwidth,
        kernel_size=kernel_size, srate=srate, out_channels=out_channels)
    out = jax.block_until_ready(out)
    assert out.shape == (batch, out_channels, height, width)

    # Pure-JAX reference of the FULL forward (pad + grouped conv), independent
    # of the kernel's internal intermediates.
    K = kernel_size
    opg = out_channels // in_channels
    pad_l = (K - 1) // 2
    pad_r = K - 1 - pad_l
    x_pad = jnp.pad(x, ((0, 0), (0, 0), (0, 0), (pad_l, pad_r)))
    x_exp = jnp.repeat(x_pad, opg, axis=1)                 # reference only
    windows = jnp.stack([x_exp[..., k:k + width] for k in range(K)], axis=-1)
    ref = jnp.einsum("nchwk,ck->nchw", windows, filt)
    if not jnp.allclose(out, ref, atol=1e-5, rtol=1e-5):
        err = float(jnp.max(jnp.abs(out - ref)))
        raise AssertionError(f"Pallas kernel output mismatch vs reference (max err {err})")

    print("KERNEL_OK")
</pallas_src>

<mosaic_0001>
module attributes {stable_mosaic.version = 11 : i64} {
  func.func @_wavelet_conv_kernel(%arg0: i32, %arg1: i32, %arg2: memref<56xf32, #tpu.memory_space<smem>>, %arg3: memref<1x1x8x128xf32, #tpu.memory_space<vmem>>, %arg4: memref<1x2x8x128xf32, #tpu.memory_space<vmem>>, %arg5: memref<8x134xf32, #tpu.memory_space<vmem>>) attributes {dimension_semantics = [#tpu.dimension_semantics<parallel>, #tpu.dimension_semantics<parallel>], iteration_bounds = array<i64: 2, 4>, scalar_prefetch = 0 : i64, scratch_operands = 1 : i64, tpu.core_type = #tpu.core_type<tc>, window_params = [{transform_indices = @transform_0, window_bounds = array<i64: 56>}, {transform_indices = @transform_1, window_bounds = array<i64: 1, 1, 8, 128>}, {transform_indices = @transform_2, window_bounds = array<i64: 1, 2, 8, 128>}]} {
    %c0 = arith.constant 0 : index
    %c0_0 = arith.constant 0 : index
    %c0_1 = arith.constant 0 : index
    %c0_2 = arith.constant 0 : index
    %0 = vector.load %arg3[%c0, %c0_0, %c0_1, %c0_2] : memref<1x1x8x128xf32, #tpu.memory_space<vmem>>, vector<1x1x8x128xf32>
    %1 = vector.shape_cast %0 : vector<1x1x8x128xf32> to vector<8x128xf32>
    %cst = arith.constant 0.000000e+00 : f32
    %2 = vector.broadcast %cst : f32 to vector<8x3xf32>
    %c0_3 = arith.constant 0 : index
    %c0_4 = arith.constant 0 : index
    %3 = vector.load %arg5[%c0_3, %c0_4] : memref<8x134xf32, #tpu.memory_space<vmem>>, vector<8x3xf32>
    tpu.vector_store %arg5[%c0_3, %c0_4], %2 {strides = array<i32>} : memref<8x134xf32, #tpu.memory_space<vmem>>, vector<8x3xf32>,
    %cst_5 = arith.constant 0.000000e+00 : f32
    %4 = vector.broadcast %cst_5 : f32 to vector<8x3xf32>
    %c0_6 = arith.constant 0 : index
    %c131 = arith.constant 131 : index
    %5 = vector.load %arg5[%c0_6, %c131] : memref<8x134xf32, #tpu.memory_space<vmem>>, vector<8x3xf32>
    tpu.vector_store %arg5[%c0_6, %c131], %4 {strides = array<i32>} : memref<8x134xf32, #tpu.memory_space<vmem>>, vector<8x3xf32>,
    %c0_7 = arith.constant 0 : index
    %c3 = arith.constant 3 : index
    %6 = vector.load %arg5[%c0_7, %c3] : memref<8x134xf32, #tpu.memory_space<vmem>>, vector<8x128xf32>
    tpu.vector_store %arg5[%c0_7, %c3], %1 {strides = array<i32>} : memref<8x134xf32, #tpu.memory_space<vmem>>, vector<8x128xf32>,
    %c14_i32 = arith.constant 14 : i32
    %7 = arith.muli %arg1, %c14_i32 : i32
    %cst_8 = arith.constant 0.000000e+00 : f32
    %8 = vector.broadcast %cst_8 : f32 to vector<8x128xf32>
    %cst_9 = arith.constant 0.000000e+00 : f32
    %9 = vector.broadcast %cst_9 : f32 to vector<8x128xf32>
    %c0_10 = arith.constant 0 : index
    %c0_11 = arith.constant 0 : index
    %10 = vector.load %arg5[%c0_10, %c0_11] : memref<8x134xf32, #tpu.memory_space<vmem>>, vector<8x128xf32>
    %c0_i32 = arith.constant 0 : i32
    %11 = arith.addi %7, %c0_i32 : i32
    %c0_i32_12 = arith.constant 0 : i32
    %12 = arith.addi %11, %c0_i32_12 : i32
    %13 = arith.index_cast %12 : i32 to index
    %14 = memref.load %arg2[%13] : memref<56xf32, #tpu.memory_space<smem>>
    %15 = vector.broadcast %14 : f32 to vector<8x128xf32>
    %16 = arith.mulf %15, %10 : vector<8x128xf32>
    %17 = arith.addf %8, %16 : vector<8x128xf32>
    %c7_i32 = arith.constant 7 : i32
    %18 = arith.addi %7, %c7_i32 : i32
    %c0_i32_13 = arith.constant 0 : i32
    %19 = arith.addi %18, %c0_i32_13 : i32
    %20 = arith.index_cast %19 : i32 to index
    %21 = memref.load %arg2[%20] : memref<56xf32, #tpu.memory_space<smem>>
    %22 = vector.broadcast %21 : f32 to vector<8x128xf32>
    %23 = arith.mulf %22, %10 : vector<8x128xf32>
    %24 = arith.addf %9, %23 : vector<8x128xf32>
    %c0_14 = arith.constant 0 : index
    %c1 = arith.constant 1 : index
    %25 = vector.load %arg5[%c0_14, %c1] : memref<8x134xf32, #tpu.memory_space<vmem>>, vector<8x128xf32>
    %c0_i32_15 = arith.constant 0 : i32
    %26 = arith.addi %7, %c0_i32_15 : i32
    %c1_i32 = arith.constant 1 : i32
    %27 = arith.addi %26, %c1_i32 : i32
    %28 = arith.index_cast %27 : i32 to index
    %29 = memref.load %arg2[%28] : memref<56xf32, #tpu.memory_space<smem>>
    %30 = vector.broadcast %29 : f32 to vector<8x128xf32>
    %31 = arith.mulf %30, %25 : vector<8x128xf32>
    %32 = arith.addf %17, %31 : vector<8x128xf32>
    %c7_i32_16 = arith.constant 7 : i32
    %33 = arith.addi %7, %c7_i32_16 : i32
    %c1_i32_17 = arith.constant 1 : i32
    %34 = arith.addi %33, %c1_i32_17 : i32
    %35 = arith.index_cast %34 : i32 to index
    %36 = memref.load %arg2[%35] : memref<56xf32, #tpu.memory_space<smem>>
    %37 = vector.broadcast %36 : f32 to vector<8x128xf32>
    %38 = arith.mulf %37, %25 : vector<8x128xf32>
    %39 = arith.addf %24, %38 : vector<8x128xf32>
    %c0_18 = arith.constant 0 : index
    %c2 = arith.constant 2 : index
    %40 = vector.load %arg5[%c0_18, %c2] : memref<8x134xf32, #tpu.memory_space<vmem>>, vector<8x128xf32>
    %c0_i32_19 = arith.constant 0 : i32
    %41 = arith.addi %7, %c0_i32_19 : i32
    %c2_i32 = arith.constant 2 : i32
    %42 = arith.addi %41, %c2_i32 : i32
    %43 = arith.index_cast %42 : i32 to index
    %44 = memref.load %arg2[%43] : memref<56xf32, #tpu.memory_space<smem>>
    %45 = vector.broadcast %44 : f32 to vector<8x128xf32>
    %46 = arith.mulf %45, %40 : vector<8x128xf32>
    %47 = arith.addf %32, %46 : vector<8x128xf32>
    %c7_i32_20 = arith.constant 7 : i32
    %48 = arith.addi %7, %c7_i32_20 : i32
    %c2_i32_21 = arith.constant 2 : i32
    %49 = arith.addi %48, %c2_i32_21 : i32
    %50 = arith.index_cast %49 : i32 to index
    %51 = memref.load %arg2[%50] : memref<56xf32, #tpu.memory_space<smem>>
    %52 = vector.broadcast %51 : f32 to vector<8x128xf32>
    %53 = arith.mulf %52, %40 : vector<8x128xf32>
    %54 = arith.addf %39, %53 : vector<8x128xf32>
    %c0_i32_22 = arith.constant 0 : i32
    %55 = arith.addi %7, %c0_i32_22 : i32
    %c3_i32 = arith.constant 3 : i32
    %56 = arith.addi %55, %c3_i32 : i32
    %57 = arith.index_cast %56 : i32 to index
    %58 = memref.load %arg2[%57] : memref<56xf32, #tpu.memory_space<smem>>
    %59 = vector.broadcast %58 : f32 to vector<8x128xf32>
    %60 = arith.mulf %59, %1 : vector<8x128xf32>
    %61 = arith.addf %47, %60 : vector<8x128xf32>
    %c7_i32_23 = arith.constant 7 : i32
    %62 = arith.addi %7, %c7_i32_23 : i32
    %c3_i32_24 = arith.constant 3 : i32
    %63 = arith.addi %62, %c3_i32_24 : i32
    %64 = arith.index_cast %63 : i32 to index
    %65 = memref.load %arg2[%64] : memref<56xf32, #tpu.memory_space<smem>>
    %66 = vector.broadcast %65 : f32 to vector<8x128xf32>
    %67 = arith.mulf %66, %1 : vector<8x128xf32>
    %68 = arith.addf %54, %67 : vector<8x128xf32>
    %c0_25 = arith.constant 0 : index
    %c4 = arith.constant 4 : index
    %69 = vector.load %arg5[%c0_25, %c4] : memref<8x134xf32, #tpu.memory_space<vmem>>, vector<8x128xf32>
    %c0_i32_26 = arith.constant 0 : i32
    %70 = arith.addi %7, %c0_i32_26 : i32
    %c4_i32 = arith.constant 4 : i32
    %71 = arith.addi %70, %c4_i32 : i32
    %72 = arith.index_cast %71 : i32 to index
    %73 = memref.load %arg2[%72] : memref<56xf32, #tpu.memory_space<smem>>
    %74 = vector.broadcast %73 : f32 to vector<8x128xf32>
    %75 = arith.mulf %74, %69 : vector<8x128xf32>
    %76 = arith.addf %61, %75 : vector<8x128xf32>
    %c7_i32_27 = arith.constant 7 : i32
    %77 = arith.addi %7, %c7_i32_27 : i32
    %c4_i32_28 = arith.constant 4 : i32
    %78 = arith.addi %77, %c4_i32_28 : i32
    %79 = arith.index_cast %78 : i32 to index
    %80 = memref.load %arg2[%79] : memref<56xf32, #tpu.memory_space<smem>>
    %81 = vector.broadcast %80 : f32 to vector<8x128xf32>
    %82 = arith.mulf %81, %69 : vector<8x128xf32>
    %83 = arith.addf %68, %82 : vector<8x128xf32>
    %c0_29 = arith.constant 0 : index
    %c5 = arith.constant 5 : index
    %84 = vector.load %arg5[%c0_29, %c5] : memref<8x134xf32, #tpu.memory_space<vmem>>, vector<8x128xf32>
    %c0_i32_30 = arith.constant 0 : i32
    %85 = arith.addi %7, %c0_i32_30 : i32
    %c5_i32 = arith.constant 5 : i32
    %86 = arith.addi %85, %c5_i32 : i32
    %87 = arith.index_cast %86 : i32 to index
    %88 = memref.load %arg2[%87] : memref<56xf32, #tpu.memory_space<smem>>
    %89 = vector.broadcast %88 : f32 to vector<8x128xf32>
    %90 = arith.mulf %89, %84 : vector<8x128xf32>
    %91 = arith.addf %76, %90 : vector<8x128xf32>
    %c7_i32_31 = arith.constant 7 : i32
    %92 = arith.addi %7, %c7_i32_31 : i32
    %c5_i32_32 = arith.constant 5 : i32
    %93 = arith.addi %92, %c5_i32_32 : i32
    %94 = arith.index_cast %93 : i32 to index
    %95 = memref.load %arg2[%94] : memref<56xf32, #tpu.memory_space<smem>>
    %96 = vector.broadcast %95 : f32 to vector<8x128xf32>
    %97 = arith.mulf %96, %84 : vector<8x128xf32>
    %98 = arith.addf %83, %97 : vector<8x128xf32>
    %c0_33 = arith.constant 0 : index
    %c6 = arith.constant 6 : index
    %99 = vector.load %arg5[%c0_33, %c6] : memref<8x134xf32, #tpu.memory_space<vmem>>, vector<8x128xf32>
    %c0_i32_34 = arith.constant 0 : i32
    %100 = arith.addi %7, %c0_i32_34 : i32
    %c6_i32 = arith.constant 6 : i32
    %101 = arith.addi %100, %c6_i32 : i32
    %102 = arith.index_cast %101 : i32 to index
    %103 = memref.load %arg2[%102] : memref<56xf32, #tpu.memory_space<smem>>
    %104 = vector.broadcast %103 : f32 to vector<8x128xf32>
    %105 = arith.mulf %104, %99 : vector<8x128xf32>
    %106 = arith.addf %91, %105 : vector<8x128xf32>
    %c7_i32_35 = arith.constant 7 : i32
    %107 = arith.addi %7, %c7_i32_35 : i32
    %c6_i32_36 = arith.constant 6 : i32
    %108 = arith.addi %107, %c6_i32_36 : i32
    %109 = arith.index_cast %108 : i32 to index
    %110 = memref.load %arg2[%109] : memref<56xf32, #tpu.memory_space<smem>>
    %111 = vector.broadcast %110 : f32 to vector<8x128xf32>
    %112 = arith.mulf %111, %99 : vector<8x128xf32>
    %113 = arith.addf %98, %112 : vector<8x128xf32>
    %c0_37 = arith.constant 0 : index
    %c0_38 = arith.constant 0 : index
    %c0_39 = arith.constant 0 : index
    %c0_40 = arith.constant 0 : index
    %114 = vector.load %arg4[%c0_37, %c0_38, %c0_39, %c0_40] : memref<1x2x8x128xf32, #tpu.memory_space<vmem>>, vector<1x1x8x128xf32>
    %115 = vector.shape_cast %114 : vector<1x1x8x128xf32> to vector<8x128xf32>
    %116 = vector.shape_cast %106 : vector<8x128xf32> to vector<1x1x8x128xf32>
    tpu.vector_store %arg4[%c0_37, %c0_38, %c0_39, %c0_40], %116 {strides = array<i32>} : memref<1x2x8x128xf32, #tpu.memory_space<vmem>>, vector<1x1x8x128xf32>,
    %c0_41 = arith.constant 0 : index
    %c1_42 = arith.constant 1 : index
    %c0_43 = arith.constant 0 : index
    %c0_44 = arith.constant 0 : index
    %117 = vector.load %arg4[%c0_41, %c1_42, %c0_43, %c0_44] : memref<1x2x8x128xf32, #tpu.memory_space<vmem>>, vector<1x1x8x128xf32>
    %118 = vector.shape_cast %117 : vector<1x1x8x128xf32> to vector<8x128xf32>
    %119 = vector.shape_cast %113 : vector<8x128xf32> to vector<1x1x8x128xf32>
    tpu.vector_store %arg4[%c0_41, %c1_42, %c0_43, %c0_44], %119 {strides = array<i32>} : memref<1x2x8x128xf32, #tpu.memory_space<vmem>>, vector<1x1x8x128xf32>,
    return
  }
  func.func @transform_0(%arg0: i32, %arg1: i32) -> i32 {
    %c0_i32 = arith.constant 0 : i32
    %c0_i32_0 = arith.constant 0 : i32
    return %c0_i32 : i32
  }
  func.func @transform_1(%arg0: i32, %arg1: i32) -> (i32, i32, i32, i32) {
    %c0_i32 = arith.constant 0 : i32
    %c0_i32_0 = arith.constant 0 : i32
    %c0_i32_1 = arith.constant 0 : i32
    return %arg0, %arg1, %c0_i32, %c0_i32_0 : i32, i32, i32, i32
  }
  func.func @transform_2(%arg0: i32, %arg1: i32) -> (i32, i32, i32, i32) {
    %c0_i32 = arith.constant 0 : i32
    %c0_i32_0 = arith.constant 0 : i32
    %c0_i32_1 = arith.constant 0 : i32
    return %arg0, %arg1, %c0_i32, %c0_i32_0 : i32, i32, i32, i32
  }
}

</mosaic_0001>

<bundles_post_ra>
// kernel: tpu_custom_call.1
= control target key start
LH: loop header
LB: loop body
LE: loop exit
PB: predicated region body
PF: predicated region fallthrough
CT: control target
= control target key end

     0   :  { %s1073_s0 = inlined_call_operand.hbm [shape: f32[56], index: 0, kind: input, shape index: {}]   ;;  %s1074_s1 = inlined_call_operand.hbm [shape: f32[2,4,8,128], index: 1, kind: input, shape index: {}]   ;;  %s1075_s2 = inlined_call_operand.hbm [shape: f32[2,8,8,128], index: 2, kind: output, shape index: {}]  }
   0x1   :  { %1082 = sst [smem:[#allocation14_spill]] %s1073_s0 }
   0x2   :  { %7 = vsyncpa [#allocation6], 0 }
   0x3   :  { %8 = vsyncpa [#allocation4], 0 }
   0x4   :  { %10 = vsyncpa [#allocation4 + $0x1], 0 }
   0x5   :  { %11 = vsyncpa [#allocation5], 0 }
   0x6   :  { %13 = vsyncpa [#allocation5 + $0x1], 0  ;;  %s781_s9 = smov 0   ;;  %s783_s10 = smov 0  }
   0x7   :  { %s785_s11 = smov 0   ;;  %s787_s12 = smov 0  }
   0x8   :  { %s789_s13 = smov 0   ;;  %s791_s14 = smov 0  }
   0x9   :  { %s793_s15 = smov 0   ;;  %s795_s16 = smov 0  }
   0xa LB: > { %s490_s17 = sadd.s32 4294967295, %s752_s16   ;;  %s491_s18 = sadd.s32 4294967294, %s752_s16   ;;  %s752_s16 = sphi %s795_s16, %s19_s16   ;;  %s748_s15 = sphi %s793_s15, %s1106_s15   ;;  %s744_s14 = sphi %s791_s14, %s1105_s14   ;;  %s740_s13 = sphi %s789_s13, %s1104_s13   ;;  %s736_s12 = sphi %s787_s12, %s1103_s12   ;;  %s732_s11 = sphi %s785_s11, %s1102_s11   ;;  %s728_s10 = sphi %s783_s10, %s1101_s10   ;;  %s724_s9 = sphi %s781_s9, %s1100_s9  }
   0xb   : > { %p74_p0 = scmp.ne.s32.totalorder %s728_s10, %s724_s9  ;;  %p825_p1 = scmp.eq.s32.totalorder %s490_s17, 0 }
   0xc   : > { %p829_p2 = scmp.eq.s32.totalorder %s490_s17, 7  ;;  %p106_p3 = scmp.eq.s32.totalorder %s491_s18, 7 }
   0xd   : > { %s1083_s19 = scalar_select %p825_p1, 1, 0 }
   0xe   : > { %p835_p4 = por %p825_p1, %p74_p0  ;;  %p492_p5 = scmp.ge.s32.totalorder %s752_s16, 1 }
   0xf   : > { %p840_p6 = por %p106_p3, %p74_p0  ;;  %p113_p7 = scmp.lt.s32.totalorder %s752_s16, 9 }
  0x10   : > { %s1085_s21 = scalar_select %p835_p4, 1, 0 }
  0x11   : > { %s1086_s22 = scalar_select %p840_p6, 1, 0 }
  0x12   : > { %p845_p8 = pnand %p492_p5, %p113_p7  ;;  %s28_s24 = sadd.s32 1, %s744_s14 }
  0x13   : > { %1087 = sst [smem:[#allocation12_spill]] %s1086_s22  ;;  %s31_s25 = sadd.s32 1, %s748_s15 }
  0x14   : > { %p517_p9 = pneg %p845_p8  ;;  %p29_p11 = scmp.ge.s32.totalorder %s28_s24, 4 }
  0x15   : > { %s1089_s0 = sld [smem:[#allocation14_spill]] }
  0x16   : > { %p518_p10 = pnand %p517_p9, %p825_p1 }
  0x18   : > { %p609_p13 = pneg %p518_p10 }
  0x1b   : > { %s607_s28 = scalar_lea.hbm %s1089_s0, 16 }
  0x1c   : > { %p608_p12 = scmp.ne.s32.totalorder %s1089_s0, %s607_s28  ;;  %p614_p5 = scmp.lt.u32.totalorder %s607_s28, %s1089_s0 }
  0x1e   : > { %p610_p0 = pnand %p609_p13, %p608_p12 }
  0x20   : > { %p611_p3 = pneg %p610_p0 }
  0x22   : > { %p616_p7 = pnand %p614_p5, %p611_p3 }
  0x24   : > { %619 = shalt.err (!%p616_p7)
}
  0x25   : > { %s754_s5 = smov [#allocation3]   ;;  %s1108_s24 = smov (%p29_p11, %s28_s24), 0 }
  0x26   : > { %520 = dma.hbm_to_smem (!%p518_p10), %s1089_s0, 16, %s754_s5, [#allocation6]  }
  0x27   : > { %1090 = sst [smem:[#allocation13_spill]] %s1108_s24  ;;  %s1110_s25 = smov (!%p29_p11, %s31_s25), %s748_s15 }
  0x28   : > { %s57_s8 = ssub.s32 %s744_s14, %s1108_s24  ;;  %s61_s17 = sadd.s32 1, %s732_s11 }
  0x29   : > { %p33_p9 = scmp.ge.s32.totalorder %s1110_s25, 2  ;;  %p68_p12 = scmp.ne.s32.totalorder %s732_s11, %s728_s10 }
  0x2a   : > { %p69_p13 = scmp.eq.s32.totalorder %s752_s16, 0  ;;  %p530_p0 = scmp.lt.s32.totalorder %s752_s16, 8 }
  0x2b   : > { %s1112_s25 = smov (%p33_p9, %s1110_s25), 0  ;;  %p885_p10 = por %p829_p2, %p68_p12 }
  0x2c   : > { %p879_p3 = por %p69_p13, %p68_p12  ;;  %s56_s27 = ssub.s32 %s748_s15, %s1112_s25 }
  0x2d   : > { %s1092_s26 = scalar_select %p885_p10, 1, 0 }
  0x2e   : > { %s135_s28 = sand.u32 1, %s732_s11   ;;  %s58_s29 = sor.u32 %s57_s8, %s56_s27 }
  0x2f   : > { %p59_p11 = scmp.eq.s32.totalorder %s58_s29, 0  ;;  %s495_s30 = sshll.u32 %s135_s28, 3 }
  0x30   : > { %s496_s3 = sshll.u32 %s748_s15, 2  ;;  %s139_s6 = scalar_lea.vmem [#allocation7], %s495_s30 }
  0x31   : > { %s894_s4 = scalar_select %p59_p11, %s732_s11, %s61_s17  }
  0x32   : > { %s144_s5 = sadd.s32 %s744_s14, %s496_s3  ;;  %s148_s7 = sshll.u32 %s139_s6, 4  ;;  %s897_s7 = int_to_ptr.vmem [resolvable:$true] %s148_s7 }
  0x33   : > { %s497_s0 = sshll.u32 %s144_s5, 7  ;;  %p908_p2 = pnand %p530_p0, %p879_p3 }
  0x34   : > { %s902_s22 = scalar_lea.hbm %s1074_s1, %s497_s0  ;;  %s136_s17 = scalar_lea.sflag [#allocation4], %s135_s28 }
  0x35   : > { %s620_s27 = scalar_lea.hbm %s902_s22, 128  ;;  %p622_p7 = pneg %p908_p2 }
  0x36   : > { %p621_p5 = scmp.ne.s32.totalorder %s902_s22, %s620_s27  ;;  %s625_s18 = scalar_lea.hbm %s1074_s1, 1024 }
  0x37   : > { %p626_p13 = scmp.lt.u32.totalorder %s902_s22, %s1074_s1  ;;  %p627_p0 = scmp.lt.u32.totalorder %s625_s18, %s620_s27 }
  0x38   : > { %p623_p9 = pnand %p622_p7, %p621_p5  ;;  %p629_p11 = scmp.lt.u32.totalorder %s620_s27, %s902_s22 }
  0x39   : > { %p628_p3 = por %p627_p0, %p626_p13 }
  0x3a   : > { %p624_p12 = pneg %p623_p9 }
  0x3b   : > { %p630_p6 = por %p629_p11, %p628_p3 }
  0x3d   : > { %p631_p10 = pnand %p630_p6, %p624_p12 }
  0x3f   : > { %634 = shalt.err (!%p631_p10)
}
  0x40   : > { %s635_s28 = scalar_lea.vmem %s897_s7, 128  ;;  %s755_s3 = smov [#allocation7]  }
  0x41   : > { %p636_p5 = scmp.ne.s32.totalorder %s897_s7, %s635_s28  ;;  %s640_s5 = sshll.u32 %s755_s3, 4  ;;  %s641_s5 = int_to_ptr.vmem [resolvable:$false] %s640_s5 }
  0x42   : > { %s642_s6 = scalar_lea.vmem %s641_s5, 256  ;;  %p643_p1 = scmp.lt.s32.totalorder %s897_s7, %s641_s5 }
  0x43   : > { %p638_p9 = pnand %p636_p5, %p622_p7  ;;  %p644_p13 = scmp.lt.s32.totalorder %s642_s6, %s635_s28 }
  0x45   : > { %p639_p4 = pneg %p638_p9  ;;  %p645_p0 = por %p644_p13, %p643_p1 }
  0x47   : > { %p646_p3 = pnand %p645_p0, %p639_p4 }
  0x49   : > { %649 = shalt.err (!%p646_p3)
}
  0x4a   : > { %524 = dma.hbm_to_vmem [thread:$0]  (!%p908_p2), %s902_s22, 128, %s897_s7, %s136_s17  }
  0x4b   : > { %157 = sbr.rel (%p845_p8) target bundleno = 385 (0x181), region = 28  ;;  %p1094_p6 = scmp.ne.s32.totalorder (!%p845_p8), %s1083_s19, 0 }
  0x52   : > { %711 = dma.done.wait (%p1094_p6), [#allocation6], 16  }
  0x53   : > { %713 = vsyncadd (%p1094_p6), [#allocation6], 4294967280  ;;  %s944_s20 = sand.u32 1, %s728_s10   ;;  %p1095_p1 = scmp.ne.s32.totalorder %s1085_s21, 0 }
  0x54   : > { %s500_s27 = sshll.u32 %s944_s20, 3  ;;  %s164_s8 = scalar_lea.sflag [#allocation4], %s944_s20 }
  0x55   : > { %s167_s0 = scalar_lea.vmem [#allocation7], %s500_s27 }
  0x56   : > { %715 = dma.done.wait (%p1095_p1), %s164_s8, 128  }
  0x57   : > { %717 = vsyncadd (%p1095_p1), %s164_s8, 4294967168 }
  0x58   : > { %172 = sfence }
  0x59   : > { %v190_v0 = vld [vmem:[%s167_s0] sm:$0xff]  ;;  %s953_s22 = smul.u32 14, %s736_s12  ;;  %vm191_vm0 = vcmask 23552   ;;  %vm193_vm1 = vcmask 48152   ;;  %s756_s19 = smov 3   ;;  %v757_v1 = vmov 0.0  }
  0x5a   : > { %196 = vrot.lane.b32.xlu0 %v190_v0, %s756_s19  ;;  %192 = vst.msk [vmem:[#allocation2] sm:$0xff] %vm191_vm0, %v757_v1  ;;  %vm199_vm2 = vcmask 1047576   ;;  %s758_s19 = smov 127   ;;  %vm226_vm3 = vcmask 1039360   ;;  %vm255_vm4 = vcmask 1031168   ;;  %vm294_vm5 = vcmask 1014784  }
  0x5b   : > { %194 = vst.msk [vmem:[#allocation2 + $0x8] sm:$0xff] %vm193_vm1, %v757_v1  ;;  %s273_s21 = sadd.s32 3, %s953_s22  ;;  %s278_s23 = sadd.s32 10, %s953_s22  ;;  %vm323_vm6 = vcmask 1006592   ;;  %vm352_vm7 = vcmask 998400  }
  0x5c   : > { %s274_s7 = sld [smem:[#allocation3 + %s273_s21]]  ;;  %s215_s24 = sadd.s32 1, %s953_s22 }
  0x5d   : > { %s279_s17 = sld [smem:[#allocation3 + %s278_s23]]  ;;  %s230_s29 = sadd.s32 8, %s953_s22 }
  0x5e   : > { %s216_s18 = sld [smem:[#allocation3 + %s215_s24]]  ;;  %s208_s30 = sadd.s32 7, %s953_s22 }
  0x5f   : > { %s231_s28 = sld [smem:[#allocation3 + %s230_s29]]  ;;  %s244_s3 = sadd.s32 2, %s953_s22 }
  0x60   : > { %s204_s5 = sld [smem:[#allocation3 + %s953_s22]]  ;;  %s259_s8 = sadd.s32 9, %s953_s22 }
  0x61   : > { %s209_s6 = sld [smem:[#allocation3 + %s208_s30]]  ;;  %s283_s21 = sadd.s32 4, %s953_s22 }
  0x62   : > { %v275_v2 = vstv %s274_s7  ;;  %s245_s27 = sld [smem:[#allocation3 + %s244_s3]]  ;;  %s298_s7 = sadd.s32 11, %s953_s22 }
  0x63   : > { %v280_v3 = vstv %s279_s17  ;;  %v958_v4 = vmul.f32 %v275_v2, %v190_v0  ;;  %s260_s0 = sld [smem:[#allocation3 + %s259_s8]]  ;;  %s759_s24 = smov 126  }
  0x64   : > { %v960_v5 = vmul.f32 %v280_v3, %v190_v0  ;;  %v217_v7 = vstv %s216_s18  ;;  %s284_s23 = sld [smem:[#allocation3 + %s283_s21]]  ;;  %s312_s18 = sadd.s32 5, %s953_s22 }
  0x65   : > { %v232_v12 = vstv %s231_s28  ;;  %s299_s17 = sld [smem:[#allocation3 + %s298_s7]]  ;;  %s327_s30 = sadd.s32 12, %s953_s22 }
  0x66   : > { %v205_v13 = vstv %s204_s5  ;;  %s313_s29 = sld [smem:[#allocation3 + %s312_s18]]  ;;  %s760_s3 = smov 124  }
  0x67   : > { %v210_v14 = vstv %s209_s6  ;;  %s328_s28 = sld [smem:[#allocation3 + %s327_s30]]  ;;  %s341_s5 = sadd.s32 6, %s953_s22 }
  0x68   : > { %v246_v17 = vstv %s245_s27  ;;  %s342_s6 = sld [smem:[#allocation3 + %s341_s5]]  ;;  %s356_s27 = sadd.s32 13, %s953_s22 }
  0x69   : > { %v261_v22 = vstv %s260_s0  ;;  %s357_s8 = sld [smem:[#allocation3 + %s356_s27]]  ;;  %s761_s0 = smov 123  }
  0x6a   : > { %v285_v25 = vstv %s284_s23  ;;  %s762_s22 = smov 122   ;;  %s504_s21 = sshll.u32 %s736_s12, 1 }
  0x6b   : > { %v300_v28 = vstv %s299_s17  ;;  %s505_s23 = sshll.u32 %s740_s13, 3  ;;  %s374_s30 = scalar_lea.sflag [#allocation5], %s944_s20 }
  0x6c   : > { %v314_v31 = vstv %s313_s29  ;;  %s386_s7 = sadd.s32 %s505_s23, %s504_s21  ;;  %p1096_p8 = scmp.ne.s32.totalorder %s1092_s26, 0 }
  0x6d   : > { %v329_v34 = vstv %s328_s28  ;;  %s506_s18 = sshll.u32 %s386_s7, 7 }
  0x6e   : > { %v343_v37 = vstv %s342_s6  ;;  %s1019_s29 = scalar_lea.hbm %s1075_s2, %s506_s18 }
  0x6f   : > { %v358_v40 = vstv %s357_s8 }
  0xcc   : > { %v197_v6 = vpop.permute.xlu0 %196 }
  0xcd   : > { %200 = vst.msk [vmem:[#allocation2] sm:$0xff] %vm199_vm2, %v197_v6 }
  0xce   : > { %201 = vst.msk [vmem:[#allocation2 + $0x8] sm:$0xff] %vm191_vm0, %v197_v6 }
  0xd4   : > { %v971_v9 = vld [vmem:[#allocation2] sm:$0xff] }
  0xd5   : > { %v969_v8 = vld [vmem:[#allocation2 + $0x8] sm:$0xff]  ;;  %v218_v11 = vmul.f32 %v217_v7, %v971_v9  ;;  %v233_v15 = vmul.f32 %v232_v12, %v971_v9  ;;  %v979_v18 = vmul.f32 %v971_v9, %v205_v13  ;;  %v982_v19 = vmul.f32 %v971_v9, %v210_v14 }
  0xd6   : > { %v219_v10 = vmul.f32 %v217_v7, %v969_v8  ;;  %v234_v16 = vmul.f32 %v232_v12, %v969_v8  ;;  %v247_v20 = vmul.f32 %v246_v17, %v971_v9  ;;  %v248_v21 = vmul.f32 %v246_v17, %v969_v8 }
  0xd7   : > { %222 = vrot.lane.b32.xlu0 %v218_v11, %s758_s19  ;;  %v262_v23 = vmul.f32 %v261_v22, %v971_v9  ;;  %v263_v24 = vmul.f32 %v261_v22, %v969_v8  ;;  %v286_v26 = vmul.f32 %v285_v25, %v971_v9  ;;  %v287_v27 = vmul.f32 %v285_v25, %v969_v8 }
  0xd8   : > { %224 = vrot.lane.b32.xlu1 %v219_v10, %s758_s19  ;;  %v301_v29 = vmul.f32 %v300_v28, %v971_v9  ;;  %v302_v30 = vmul.f32 %v300_v28, %v969_v8  ;;  %v315_v32 = vmul.f32 %v314_v31, %v971_v9  ;;  %v316_v33 = vmul.f32 %v314_v31, %v969_v8 }
  0xd9   : > { %v330_v35 = vmul.f32 %v329_v34, %v971_v9  ;;  %v331_v36 = vmul.f32 %v329_v34, %v969_v8  ;;  %v344_v38 = vmul.f32 %v343_v37, %v971_v9  ;;  %v345_v39 = vmul.f32 %v343_v37, %v969_v8 }
  0xda   : > { %v359_v41 = vmul.f32 %v358_v40, %v971_v9  ;;  %v360_v42 = vmul.f32 %v358_v40, %v969_v8 }
  0xdb   : > { %239 = vrot.lane.b32.xlu0 %v234_v16, %s758_s19 }
  0xdc   : > { %237 = vrot.lane.b32.xlu1 %v233_v15, %s758_s19  ;;  %s501_s19 = sshll.u32 %s944_s20, 4 }
  0xdd   : > { %s188_s17 = scalar_lea.vmem [#allocation8], %s501_s19 }
  0xdf   : > { %253 = vrot.lane.b32.xlu0 %v248_v21, %s759_s24 }
  0xe0   : > { %251 = vrot.lane.b32.xlu1 %v247_v20, %s759_s24 }
  0xe3   : > { %268 = vrot.lane.b32.xlu0 %v263_v24, %s759_s24 }
  0xe4   : > { %266 = vrot.lane.b32.xlu1 %v262_v23, %s759_s24  ;;  %s389_s24 = sshll.u32 %s188_s17, 4  ;;  %s1013_s24 = int_to_ptr.vmem [resolvable:$true] %s389_s24 }
  0xe5   : > { %s650_s28 = scalar_lea.vmem %s1013_s24, 256 }
  0xe6   : > { %p651_p4 = scmp.ne.s32.totalorder %s1013_s24, %s650_s28 }
  0xe7   : > { %292 = vrot.lane.b32.xlu0 %v287_v27, %s760_s3 }
  0xe8   : > { %290 = vrot.lane.b32.xlu1 %v286_v26, %s760_s3  ;;  %p652_p10 = pnand %p651_p4, %p1096_p8 }
  0xea   : > { %p653_p2 = pneg %p652_p10 }
  0xeb   : > { %307 = vrot.lane.b32.xlu0 %v302_v30, %s760_s3 }
  0xec   : > { %305 = vrot.lane.b32.xlu1 %v301_v29, %s760_s3  ;;  %s763_s3 = smov [#allocation8]  }
  0xed   : > { %s654_s5 = sshll.u32 %s763_s3, 4  ;;  %s655_s5 = int_to_ptr.vmem [resolvable:$false] %s654_s5 }
  0xee   : > { %s656_s6 = scalar_lea.vmem %s655_s5, 512  ;;  %p657_p7 = scmp.lt.s32.totalorder %s1013_s24, %s655_s5 }
  0xef   : > { %321 = vrot.lane.b32.xlu0 %v316_v33, %s761_s0  ;;  %p658_p12 = scmp.lt.s32.totalorder %s656_s6, %s650_s28 }
  0xf0   : > { %319 = vrot.lane.b32.xlu1 %v315_v32, %s761_s0 }
  0xf1   : > { %p659_p11 = por %p658_p12, %p657_p7 }
  0xf3   : > { %336 = vrot.lane.b32.xlu0 %v331_v36, %s761_s0  ;;  %p660_p5 = pnand %p659_p11, %p653_p2 }
  0xf4   : > { %334 = vrot.lane.b32.xlu1 %v330_v35, %s761_s0 }
  0xf7   : > { %350 = vrot.lane.b32.xlu0 %v345_v39, %s762_s22 }
  0xf8   : > { %348 = vrot.lane.b32.xlu1 %v344_v38, %s762_s22 }
  0xfb   : > { %365 = vrot.lane.b32.xlu0 %v360_v42, %s762_s22 }
  0xfc   : > { %363 = vrot.lane.b32.xlu1 %v359_v41, %s762_s22 }
 0x149   : > { %v223_v44 = vpop.permute.xlu0 %222 }
 0x14a   : > { %v225_v43 = vpop.permute.xlu1 %224 }
 0x14b   : > { %v227_v47 = vsel %vm226_vm3, %v223_v44, %v225_v43 }
 0x14c   : > { %v229_v48 = vadd.f32 %v227_v47, %v979_v18 }
 0x14d   : > { %v240_v46 = vpop.permute.xlu0 %239 }
 0x14e   : > { %v238_v45 = vpop.permute.xlu1 %237 }
 0x14f   : > { %v241_v51 = vsel %vm226_vm3, %v238_v45, %v240_v46 }
 0x150   : > { %v243_v54 = vadd.f32 %v241_v51, %v982_v19 }
 0x151   : > { %v254_v50 = vpop.permute.xlu0 %253 }
 0x152   : > { %v252_v49 = vpop.permute.xlu1 %251 }
 0x153   : > { %v256_v52 = vsel %vm255_vm4, %v252_v49, %v254_v50 }
 0x154   : > { %v258_v53 = vadd.f32 %v256_v52, %v229_v48 }
 0x155   : > { %v269_v56 = vpop.permute.xlu0 %268 }
 0x156   : > { %v267_v55 = vpop.permute.xlu1 %266  ;;  %v277_v57 = vadd.f32 %v958_v4, %v258_v53 }
 0x157   : > { %v270_v58 = vsel %vm255_vm4, %v267_v55, %v269_v56 }
 0x158   : > { %v272_v59 = vadd.f32 %v270_v58, %v243_v54 }
 0x159   : > { %v293_v61 = vpop.permute.xlu0 %292 }
 0x15a   : > { %v291_v60 = vpop.permute.xlu1 %290  ;;  %v282_v62 = vadd.f32 %v960_v5, %v272_v59 }
 0x15b   : > { %v295_v3 = vsel %vm294_vm5, %v291_v60, %v293_v61 }
 0x15c   : > { %v297_v4 = vadd.f32 %v295_v3, %v277_v57 }
 0x15d   : > { %v308_v0 = vpop.permute.xlu0 %307 }
 0x15e   : > { %v306_v63 = vpop.permute.xlu1 %305 }
 0x15f   : > { %v309_v9 = vsel %vm294_vm5, %v306_v63, %v308_v0 }
 0x160   : > { %v311_v14 = vadd.f32 %v309_v9, %v282_v62 }
 0x161   : > { %v322_v2 = vpop.permute.xlu0 %321 }
 0x162   : > { %v320_v1 = vpop.permute.xlu1 %319 }
 0x163   : > { %v324_v8 = vsel %vm323_vm6, %v320_v1, %v322_v2 }
 0x164   : > { %v326_v10 = vadd.f32 %v324_v8, %v297_v4 }
 0x165   : > { %v337_v7 = vpop.permute.xlu0 %336 }
 0x166   : > { %v335_v6 = vpop.permute.xlu1 %334 }
 0x167   : > { %v338_v5 = vsel %vm323_vm6, %v335_v6, %v337_v7 }
 0x168   : > { %v340_v16 = vadd.f32 %v338_v5, %v311_v14 }
 0x169   : > { %v351_v12 = vpop.permute.xlu0 %350 }
 0x16a   : > { %v349_v11 = vpop.permute.xlu1 %348 }
 0x16b   : > { %v353_v13 = vsel %vm352_vm7, %v349_v11, %v351_v12 }
 0x16c   : > { %v355_v15 = vadd.f32 %v353_v13, %v326_v10 }
 0x16d   : > { %v366_v18 = vpop.permute.xlu0 %365 }
 0x16e   : > { %370 = vst [vmem:[%s188_s17] sm:$0xff] %v355_v15  ;;  %v364_v17 = vpop.permute.xlu1 %363 }
 0x16f   : > { %v367_v19 = vsel %vm352_vm7, %v364_v17, %v366_v18 }
 0x170   : > { %v369_v20 = vadd.f32 %v367_v19, %v340_v16 }
 0x172   : > { %502 = vst [vmem:[%s188_s17 + $0x8] sm:$0xff] %v369_v20 }
 0x173   : > { %663 = shalt.err (!%p660_p5)
}
 0x174   : > { %s664_s27 = scalar_lea.hbm %s1019_s29, 256  ;;  %s668_s22 = scalar_lea.hbm %s1075_s2, 2048 }
 0x175   : > { %p665_p9 = scmp.ne.s32.totalorder %s1019_s29, %s664_s27  ;;  %p669_p3 = scmp.lt.u32.totalorder %s1019_s29, %s1075_s2 }
 0x176   : > { %p670_p6 = scmp.lt.u32.totalorder %s668_s22, %s664_s27  ;;  %p672_p4 = scmp.lt.u32.totalorder %s664_s27, %s1019_s29 }
 0x177   : > { %p666_p13 = pnand %p665_p9, %p1096_p8 }
 0x178   : > { %p671_p1 = por %p670_p6, %p669_p3 }
 0x179   : > { %p667_p0 = pneg %p666_p13 }
 0x17a   : > { %p673_p10 = por %p672_p4, %p671_p1 }
 0x17c   : > { %p674_p2 = pnand %p673_p10, %p667_p0 }
 0x17e   : > { %677 = shalt.err (!%p674_p2)
}
 0x17f   : > { %s764_s23 = smov 128   ;;  %s765_s7 = smov 8  }
 0x180   : > { %515 = dma.vmem_to_hbm [thread:$0]  (%p1096_p8), %s1013_s24, 256, %s1019_s29, %s374_s30, %s764_s23, %s764_s23, %s765_s7  }
 0x181 PF: > { %s1097_s17 = sld [smem:[#allocation12_spill]]  ;;  %p532_p7 = scmp.ge.s32.totalorder %s752_s16, 2 }
 0x182   : > { %s404_s18 = sand.u32 1, %s724_s9  }
 0x183   : > { %s405_s12 = scalar_lea.sflag [#allocation5], %s404_s18 }
 0x187   : > { %p1098_p12 = scmp.ne.s32.totalorder %s1097_s17, 0 }
 0x189   : > { %p526_p11 = pnand %p532_p7, %p1098_p12 }
 0x18b   : > { %719 = dma.done.wait (!%p526_p11), %s405_s12, 256  }
 0x18c   : > { %721 = vsyncadd (!%p526_p11), %s405_s12, 4294967040  ;;  %s19_s16 = sadd.s32 1, %s752_s16   ;;  %s1099_s26 = sld [smem:[#allocation13_spill]] }
 0x18d   : > { %p16_p5 = scmp.ge.s32.totalorder %s19_s16, 10   ;;  %s1100_s9 = smov %s728_s10 }
 0x18e   : > { %s1101_s10 = smov %s732_s11  ;;  %s1102_s11 = smov %s894_s4 }
 0x18f   : > { %s1103_s12 = smov %s744_s14  ;;  %s1104_s13 = smov %s748_s15 }
 0x190   : > { %s1106_s15 = smov %s1112_s25  ;;  %18 = sbr.rel (!%p16_p5) target bundleno = 10 (0xa), region = 79 }
 0x192   : > { %s1105_s14 = smov %s1099_s26 }
 0x197   :  { %410 = vsyncpa [#allocation4], 1 }
 0x198   :  { %412 = vsyncpa [#allocation4 + $0x1], 1 }
 0x199   :  { %413 = vsyncpa [#allocation5], 1 }
 0x19a   :  { %415 = vsyncpa [#allocation5 + $0x1], 1 }
 0x19b   :  { %416 = vsyncpa [#allocation6], 1 }
 0x19c   :  { %418 = vsyncpa [#allocation6 + $0x1], 1 }

</bundles_post_ra>
